<compile_context>
chip_gen: v7x
topology: tpu7x:2x2x1
jax: 0.10.0
libtpu: 0.0.40
codegen_flags: <defaults>
</compile_context>

<pallas_src>
import functools
import math

import jax
import jax.numpy as jnp
from jax import lax
from jax.experimental import pallas as pl
from jax.experimental.pallas import tpu as pltpu


def _prep_tile(ref, *, normalize, inv_sqrt_t, mxu_dtype):
    """Load a (tile, D) block, optionally L2-normalize rows, fold in 1/sqrt(T),
    and cast to the MXU operand dtype."""
    x = ref[...].astype(jnp.float32)
    if normalize:
        # F.normalize(x, p=2, dim=-1) == x / max(||x||, 1e-12); rsqrt on EUP.
        nsq = jnp.sum(x * x, axis=-1, keepdims=True)
        x = x * (lax.rsqrt(jnp.maximum(nsq, 1e-24)) * inv_sqrt_t)
    else:
        x = x * inv_sqrt_t
    return x.astype(mxu_dtype)


def _simclr_kernel(zi_q_ref, zj_q_ref, zi_k_ref, zj_k_ref, out_ref,
                   m_a, l_a, m_b, l_b,
                   *, temperature, normalize, tile, n_valid, n_total, mxu_dtype):
    i = pl.program_id(0)          # query row-tile   ("parallel")
    k = pl.program_id(1)          # key/column tile  ("arbitrary", innermost)

    @pl.when(k == 0)
    def _init():
        m_a[...] = jnp.full_like(m_a, -1e30)
        l_a[...] = jnp.zeros_like(l_a)
        m_b[...] = jnp.full_like(m_b, -1e30)
        l_b[...] = jnp.zeros_like(l_b)

    inv_sqrt_t = jnp.float32(1.0 / math.sqrt(temperature))
    prep = functools.partial(_prep_tile, normalize=normalize,
                             inv_sqrt_t=inv_sqrt_t, mxu_dtype=mxu_dtype)
    qa = prep(zi_q_ref)           # (tile, D) view-a queries
    qb = prep(zj_q_ref)           # (tile, D) view-b queries
    ka = prep(zi_k_ref)           # (tile, D) view-a keys
    kb = prep(zj_k_ref)           # (tile, D) view-b keys

    # A @ B.T on the MXU (contract the feature dim); f32 accumulation.
    dn = (((1,), (1,)), ((), ()))
    s_aa = lax.dot_general(qa, ka, dn, preferred_element_type=jnp.float32)
    s_ab = lax.dot_general(qa, kb, dn, preferred_element_type=jnp.float32)
    s_ba = lax.dot_general(qb, ka, dn, preferred_element_type=jnp.float32)
    s_bb = lax.dot_general(qb, kb, dn, preferred_element_type=jnp.float32)

    # Per-tile diagonal / padded-key masks from (tile,1) x (1,tile) broadcast
    # iotas — no full-B iota or bool matrices are ever materialized.
    neg_big = jnp.float32(-1e30)
    row_g = i * tile + lax.broadcasted_iota(jnp.int32, (tile, 1), 0)
    col_g = k * tile + lax.broadcasted_iota(jnp.int32, (1, tile), 1)
    self_mask = row_g == col_g                        # (tile, tile)
    if n_valid != n_total:                            # batch was padded
        key_pad = col_g >= n_valid                    # (1, tile)
        s_ab = jnp.where(key_pad, neg_big, s_ab)
        s_ba = jnp.where(key_pad, neg_big, s_ba)
        self_mask = jnp.logical_or(self_mask, key_pad)
    s_aa = jnp.where(self_mask, neg_big, s_aa)
    s_bb = jnp.where(self_mask, neg_big, s_bb)

    # Online logsumexp over the key axis (all reductions are on the lane axis).
    def update(m_ref, l_ref, s0, s1):
        blk = jnp.maximum(jnp.max(s0, axis=-1, keepdims=True),
                          jnp.max(s1, axis=-1, keepdims=True))
        m_new = jnp.maximum(m_ref[...], blk)
        l_ref[...] = (l_ref[...] * jnp.exp(m_ref[...] - m_new)
                      + jnp.sum(jnp.exp(s0 - m_new), axis=-1, keepdims=True)
                      + jnp.sum(jnp.exp(s1 - m_new), axis=-1, keepdims=True))
        m_ref[...] = m_new

    update(m_a, l_a, s_aa, s_ab)   # view a, row r: aa[r,:]\diag  ∪  ab[r,:]
    update(m_b, l_b, s_ba, s_bb)   # view b, row r: ba[r,:]       ∪  bb[r,:]\diag

    @pl.when(k == pl.num_programs(1) - 1)
    def _finalize():
        # Positives: diag(ab) == diag(ba) == <zi_s[r], zj_s[r]>.
        pos = jnp.sum(qa.astype(jnp.float32) * qb.astype(jnp.float32),
                      axis=-1, keepdims=True)
        lse_a = m_a[...] + jnp.log(l_a[...])
        lse_b = m_b[...] + jnp.log(l_b[...])
        out_ref[...] = lse_a + lse_b - 2.0 * pos


def _choose_tiling(B, D, itemsize):
    """Pick (tile, padded_batch): prefer tiles that divide B (no padding),
    bounded so the double-buffered input slabs stay well inside VMEM."""
    candidates = []
    for t in (256, 128):
        if B % t == 0:
            candidates.append((t, B))
    if not candidates:
        if B <= 256:
            bp = -(-B // 8) * 8
            candidates.append((bp, bp))
        else:
            candidates.append((256, -(-B // 256) * 256))
            candidates.append((128, -(-B // 128) * 128))
    for t, bp in candidates:
        if 8 * t * D * itemsize + 4 * t * D * 4 + 16 * t * t * 4 <= (24 << 20):
            return t, bp
    return candidates[-1]


def simclr_loss(z_i, z_j, *, temperature=1.0, normalize=True,
                mxu_dtype=jnp.bfloat16, block_rows=None):
    """NT-Xent (SimCLR) loss with the semantics of SimclrCriterion.forward.

    mxu_dtype: operand dtype for the four per-tile MXU matmuls (accumulation is
      always f32).  bfloat16 (default) is ~4-8x faster on the MXU; pass
      jnp.float32 for bit-faithful f32 logits.
    """
    B, D = z_i.shape
    assert z_j.shape == (B, D)
    itemsize = max(jnp.dtype(z_i.dtype).itemsize, jnp.dtype(z_j.dtype).itemsize)

    if block_rows is not None:
        assert block_rows % 8 == 0, "block_rows must be a multiple of 8"
        tile = int(block_rows)
        Bp = -(-B // tile) * tile
    else:
        tile, Bp = _choose_tiling(B, D, itemsize)

    # No wrapper-side dtype cast / feature padding (kernel casts per tile; a
    # full-D block is exempt from lane divisibility).  Row padding only when B
    # is not tile-friendly; padded keys are masked inside the kernel.
    if Bp != B:
        pad = ((0, Bp - B), (0, 0))
        z_i = jnp.pad(z_i, pad)
        z_j = jnp.pad(z_j, pad)

    n_tiles = Bp // tile
    grid = (n_tiles, n_tiles)

    kernel = functools.partial(
        _simclr_kernel, temperature=float(temperature),
        normalize=bool(normalize), tile=tile, n_valid=B, n_total=Bp,
        mxu_dtype=mxu_dtype)

    # Generation-aware VMEM limit: actual per-step footprint, capped below the
    # chip's physical VMEM with headroom for Mosaic internals (v7x: 64 MiB).
    try:
        vmem_cap = int(pltpu.get_tpu_info().vmem_capacity_bytes)
    except Exception:
        vmem_cap = 64 << 20
    est = (8 * tile * D * itemsize        # 4 input tiles, double-buffered
           + 4 * tile * D * 4             # prepped working copies
           + 16 * tile * tile * 4         # 4 logits tiles + exp temporaries
           + (4 << 20))                   # margin
    vmem_limit = int(min(vmem_cap - (8 << 20), max(32 << 20, est)))

    cost = pl.CostEstimate(
        flops=int(2 * 4 * Bp * Bp * D + 12 * Bp * Bp),
        transcendentals=int(4 * Bp * Bp + 4 * Bp * n_tiles + 2 * Bp),
        bytes_accessed=int(n_tiles * n_tiles * 4 * tile * D * itemsize + 4 * Bp),
    )

    per_row = pl.pallas_call(
        kernel,
        out_shape=jax.ShapeDtypeStruct((Bp, 1), jnp.float32),
        grid_spec=pltpu.PrefetchScalarGridSpec(
            num_scalar_prefetch=0,
            grid=grid,
            in_specs=[
                pl.BlockSpec((tile, D), lambda i, k: (i, 0)),   # zi queries
                pl.BlockSpec((tile, D), lambda i, k: (i, 0)),   # zj queries
                pl.BlockSpec((tile, D), lambda i, k: (k, 0)),   # zi keys
                pl.BlockSpec((tile, D), lambda i, k: (k, 0)),   # zj keys
            ],
            out_specs=pl.BlockSpec((tile, 1), lambda i, k: (i, 0)),
            scratch_shapes=[pltpu.VMEM((tile, 1), jnp.float32)
                            for _ in range(4)],
        ),
        compiler_params=pltpu.CompilerParams(
            dimension_semantics=("parallel", "arbitrary"),
            vmem_limit_bytes=vmem_limit),
        cost_estimate=cost,
    )(z_i, z_j, z_i, z_j)

    # loss = mean over 2B rows of (lse - pos) = sum(per-row contributions)/(2B).
    return jnp.sum(per_row[:B, 0]) / jnp.float32(2 * B)


def _reference_loss(z_i, z_j, temperature=1.0, normalize=True):
    """Pure-JAX replica of the PyTorch forward (for verification)."""
    if normalize:
        z_i = z_i / jnp.maximum(jnp.linalg.norm(z_i, axis=-1, keepdims=True), 1e-12)
        z_j = z_j / jnp.maximum(jnp.linalg.norm(z_j, axis=-1, keepdims=True), 1e-12)
    B = z_i.shape[0]
    aa = z_i @ z_i.T / temperature
    bb = z_j @ z_j.T / temperature
    ab = z_i @ z_j.T / temperature
    ba = z_j @ z_i.T / temperature
    mask = ~jnp.eye(B, dtype=bool)
    off = lambda m: m[mask].reshape(B, B - 1)
    pos = jnp.concatenate([jnp.diag(ab), jnp.diag(ba)])[:, None]
    neg_a = jnp.concatenate([off(aa), off(ab)], axis=1)
    neg_b = jnp.concatenate([off(ba), off(bb)], axis=1)
    neg = jnp.concatenate([neg_a, neg_b], axis=0)
    logits = jnp.concatenate([pos, neg], axis=1)
    lse = jax.scipy.special.logsumexp(logits, axis=1)
    return jnp.mean(lse - logits[:, 0])


if __name__ == "__main__":
    key = jax.random.PRNGKey(0)

    def check(B, D, temperature, normalize, mxu_dtype, block_rows, tol):
        k1, k2 = jax.random.split(jax.random.fold_in(key, B * 1000 + D))
        z_i = jax.random.normal(k1, (B, D), dtype=jnp.float32)
        z_j = jax.random.normal(k2, (B, D), dtype=jnp.float32)
        loss = simclr_loss(z_i, z_j, temperature=temperature,
                           normalize=normalize, mxu_dtype=mxu_dtype,
                           block_rows=block_rows)
        loss = jax.block_until_ready(loss)
        ref = _reference_loss(z_i, z_j, temperature=temperature,
                              normalize=normalize)
        assert jnp.allclose(loss, ref, rtol=tol, atol=tol), \
            (B, D, temperature, normalize, str(mxu_dtype), float(loss), float(ref))

    # Small shapes consistent with the module (batch=8, hidden=32), T=0.5.
    check(8, 32, 0.5, True, jnp.float32, None, 1e-5)    # exact f32 MXU path
    check(8, 32, 0.5, False, jnp.float32, None, 1e-5)   # un-normalized path
    check(8, 32, 0.5, True, jnp.bfloat16, None, 5e-2)   # default bf16 MXU path
    # Multi-tile grid: exercises online logsumexp + per-tile diagonal masking.
    check(32, 48, 0.2, True, jnp.float32, 8, 1e-4)
    # Batch not a multiple of the tile: padded rows + padded-key masking.
    check(20, 32, 0.5, True, jnp.float32, 8, 1e-4)

    print("KERNEL_OK")
</pallas_src>

<mosaic_0001>
module attributes {stable_mosaic.version = 11 : i64} {
  func.func @_simclr_kernel(%arg0: i32, %arg1: i32, %arg2: memref<8x32xf32, #tpu.memory_space<vmem>>, %arg3: memref<8x32xf32, #tpu.memory_space<vmem>>, %arg4: memref<8x32xf32, #tpu.memory_space<vmem>>, %arg5: memref<8x32xf32, #tpu.memory_space<vmem>>, %arg6: memref<8x1xf32, #tpu.memory_space<vmem>>, %arg7: memref<8x1xf32, #tpu.memory_space<vmem>>, %arg8: memref<8x1xf32, #tpu.memory_space<vmem>>, %arg9: memref<8x1xf32, #tpu.memory_space<vmem>>, %arg10: memref<8x1xf32, #tpu.memory_space<vmem>>) attributes {dimension_semantics = [#tpu.dimension_semantics<parallel>, #tpu.dimension_semantics<arbitrary>], iteration_bounds = array<i64: 1, 1>, scalar_prefetch = 0 : i64, scratch_operands = 4 : i64, tpu.core_type = #tpu.core_type<tc>, window_params = [{transform_indices = @transform_0, window_bounds = array<i64: 8, 32>}, {transform_indices = @transform_1, window_bounds = array<i64: 8, 32>}, {transform_indices = @transform_2, window_bounds = array<i64: 8, 32>}, {transform_indices = @transform_3, window_bounds = array<i64: 8, 32>}, {transform_indices = @transform_4, window_bounds = array<i64: 8, 1>}]} {
    %c0_i32 = arith.constant 0 : i32
    %0 = arith.cmpi eq, %arg1, %c0_i32 : i32
    %1 = arith.extui %0 : i1 to i32
    %c0_i32_0 = arith.constant 0 : i32
    %2 = arith.cmpi ne, %1, %c0_i32_0 : i32
    scf.if %2 {
      %cst_56 = arith.constant -1.000000e+30 : f32
      %121 = vector.broadcast %cst_56 : f32 to vector<8x1xf32>
      %c0_57 = arith.constant 0 : index
      %c0_58 = arith.constant 0 : index
      %122 = vector.load %arg7[%c0_57, %c0_58] : memref<8x1xf32, #tpu.memory_space<vmem>>, vector<8x1xf32>
      tpu.vector_store %arg7[%c0_57, %c0_58], %121 {strides = array<i32>} : memref<8x1xf32, #tpu.memory_space<vmem>>, vector<8x1xf32>,
      %cst_59 = arith.constant 0.000000e+00 : f32
      %123 = vector.broadcast %cst_59 : f32 to vector<8x1xf32>
      %c0_60 = arith.constant 0 : index
      %c0_61 = arith.constant 0 : index
      %124 = vector.load %arg8[%c0_60, %c0_61] : memref<8x1xf32, #tpu.memory_space<vmem>>, vector<8x1xf32>
      tpu.vector_store %arg8[%c0_60, %c0_61], %123 {strides = array<i32>} : memref<8x1xf32, #tpu.memory_space<vmem>>, vector<8x1xf32>,
      %cst_62 = arith.constant -1.000000e+30 : f32
      %125 = vector.broadcast %cst_62 : f32 to vector<8x1xf32>
      %c0_63 = arith.constant 0 : index
      %c0_64 = arith.constant 0 : index
      %126 = vector.load %arg9[%c0_63, %c0_64] : memref<8x1xf32, #tpu.memory_space<vmem>>, vector<8x1xf32>
      tpu.vector_store %arg9[%c0_63, %c0_64], %125 {strides = array<i32>} : memref<8x1xf32, #tpu.memory_space<vmem>>, vector<8x1xf32>,
      %cst_65 = arith.constant 0.000000e+00 : f32
      %127 = vector.broadcast %cst_65 : f32 to vector<8x1xf32>
      %c0_66 = arith.constant 0 : index
      %c0_67 = arith.constant 0 : index
      %128 = vector.load %arg10[%c0_66, %c0_67] : memref<8x1xf32, #tpu.memory_space<vmem>>, vector<8x1xf32>
      tpu.vector_store %arg10[%c0_66, %c0_67], %127 {strides = array<i32>} : memref<8x1xf32, #tpu.memory_space<vmem>>, vector<8x1xf32>,
    } else {
    }
    %c0 = arith.constant 0 : index
    %c0_1 = arith.constant 0 : index
    %3 = vector.load %arg2[%c0, %c0_1] : memref<8x32xf32, #tpu.memory_space<vmem>>, vector<8x32xf32>
    %4 = arith.mulf %3, %3 : vector<8x32xf32>
    %cst = arith.constant dense<0.000000e+00> : vector<8xf32>
    %5 = vector.multi_reduction <add>, %4, %cst [1] : vector<8x32xf32> to vector<8xf32>
    %6 = vector.shape_cast %5 : vector<8xf32> to vector<8x1xf32>
    %cst_2 = arith.constant 1.000000e-24 : f32
    %7 = vector.broadcast %cst_2 : f32 to vector<8x1xf32>
    %8 = arith.maximumf %6, %7 : vector<8x1xf32>
    %9 = math.rsqrt %8 : vector<8x1xf32>
    %cst_3 = arith.constant 1.41421354 : f32
    %10 = vector.broadcast %cst_3 : f32 to vector<8x1xf32>
    %11 = arith.mulf %9, %10 : vector<8x1xf32>
    %12 = vector.broadcast %11 : vector<8x1xf32> to vector<8x32xf32>
    %13 = arith.mulf %3, %12 : vector<8x32xf32>
    %c0_4 = arith.constant 0 : index
    %c0_5 = arith.constant 0 : index
    %14 = vector.load %arg3[%c0_4, %c0_5] : memref<8x32xf32, #tpu.memory_space<vmem>>, vector<8x32xf32>
    %15 = arith.mulf %14, %14 : vector<8x32xf32>
    %cst_6 = arith.constant dense<0.000000e+00> : vector<8xf32>
    %16 = vector.multi_reduction <add>, %15, %cst_6 [1] : vector<8x32xf32> to vector<8xf32>
    %17 = vector.shape_cast %16 : vector<8xf32> to vector<8x1xf32>
    %cst_7 = arith.constant 1.000000e-24 : f32
    %18 = vector.broadcast %cst_7 : f32 to vector<8x1xf32>
    %19 = arith.maximumf %17, %18 : vector<8x1xf32>
    %20 = math.rsqrt %19 : vector<8x1xf32>
    %cst_8 = arith.constant 1.41421354 : f32
    %21 = vector.broadcast %cst_8 : f32 to vector<8x1xf32>
    %22 = arith.mulf %20, %21 : vector<8x1xf32>
    %23 = vector.broadcast %22 : vector<8x1xf32> to vector<8x32xf32>
    %24 = arith.mulf %14, %23 : vector<8x32xf32>
    %c0_9 = arith.constant 0 : index
    %c0_10 = arith.constant 0 : index
    %25 = vector.load %arg4[%c0_9, %c0_10] : memref<8x32xf32, #tpu.memory_space<vmem>>, vector<8x32xf32>
    %26 = arith.mulf %25, %25 : vector<8x32xf32>
    %cst_11 = arith.constant dense<0.000000e+00> : vector<8xf32>
    %27 = vector.multi_reduction <add>, %26, %cst_11 [1] : vector<8x32xf32> to vector<8xf32>
    %28 = vector.shape_cast %27 : vector<8xf32> to vector<8x1xf32>
    %cst_12 = arith.constant 1.000000e-24 : f32
    %29 = vector.broadcast %cst_12 : f32 to vector<8x1xf32>
    %30 = arith.maximumf %28, %29 : vector<8x1xf32>
    %31 = math.rsqrt %30 : vector<8x1xf32>
    %cst_13 = arith.constant 1.41421354 : f32
    %32 = vector.broadcast %cst_13 : f32 to vector<8x1xf32>
    %33 = arith.mulf %31, %32 : vector<8x1xf32>
    %34 = vector.broadcast %33 : vector<8x1xf32> to vector<8x32xf32>
    %35 = arith.mulf %25, %34 : vector<8x32xf32>
    %c0_14 = arith.constant 0 : index
    %c0_15 = arith.constant 0 : index
    %36 = vector.load %arg5[%c0_14, %c0_15] : memref<8x32xf32, #tpu.memory_space<vmem>>, vector<8x32xf32>
    %37 = arith.mulf %36, %36 : vector<8x32xf32>
    %cst_16 = arith.constant dense<0.000000e+00> : vector<8xf32>
    %38 = vector.multi_reduction <add>, %37, %cst_16 [1] : vector<8x32xf32> to vector<8xf32>
    %39 = vector.shape_cast %38 : vector<8xf32> to vector<8x1xf32>
    %cst_17 = arith.constant 1.000000e-24 : f32
    %40 = vector.broadcast %cst_17 : f32 to vector<8x1xf32>
    %41 = arith.maximumf %39, %40 : vector<8x1xf32>
    %42 = math.rsqrt %41 : vector<8x1xf32>
    %cst_18 = arith.constant 1.41421354 : f32
    %43 = vector.broadcast %cst_18 : f32 to vector<8x1xf32>
    %44 = arith.mulf %42, %43 : vector<8x1xf32>
    %45 = vector.broadcast %44 : vector<8x1xf32> to vector<8x32xf32>
    %46 = arith.mulf %36, %45 : vector<8x32xf32>
    %cst_19 = arith.constant dense<0.000000e+00> : vector<8x8xf32>
    %47 = tpu.matmul %13, %35, %cst_19 {dimension_numbers = #tpu.dot_dimension_numbers<[1], [1], [0], [0], [0, 0, 1, 0], [], []>} : vector<8x32xf32>, vector<8x32xf32>, vector<8x8xf32> -> vector<8x8xf32>
    %cst_20 = arith.constant dense<0.000000e+00> : vector<8x8xf32>
    %48 = tpu.matmul %13, %46, %cst_20 {dimension_numbers = #tpu.dot_dimension_numbers<[1], [1], [0], [0], [0, 0, 1, 0], [], []>} : vector<8x32xf32>, vector<8x32xf32>, vector<8x8xf32> -> vector<8x8xf32>
    %cst_21 = arith.constant dense<0.000000e+00> : vector<8x8xf32>
    %49 = tpu.matmul %24, %35, %cst_21 {dimension_numbers = #tpu.dot_dimension_numbers<[1], [1], [0], [0], [0, 0, 1, 0], [], []>} : vector<8x32xf32>, vector<8x32xf32>, vector<8x8xf32> -> vector<8x8xf32>
    %cst_22 = arith.constant dense<0.000000e+00> : vector<8x8xf32>
    %50 = tpu.matmul %24, %46, %cst_22 {dimension_numbers = #tpu.dot_dimension_numbers<[1], [1], [0], [0], [0, 0, 1, 0], [], []>} : vector<8x32xf32>, vector<8x32xf32>, vector<8x8xf32> -> vector<8x8xf32>
    %c8_i32 = arith.constant 8 : i32
    %51 = arith.muli %arg0, %c8_i32 : i32
    %52 = tpu.iota {dimensions = array<i32: 0>} : vector<8x1xi32>
    %53 = vector.broadcast %51 : i32 to vector<8x1xi32>
    %54 = arith.addi %53, %52 : vector<8x1xi32>
    %c8_i32_23 = arith.constant 8 : i32
    %55 = arith.muli %arg1, %c8_i32_23 : i32
    %56 = tpu.iota {dimensions = array<i32: 1>} : vector<1x8xi32>
    %57 = vector.broadcast %55 : i32 to vector<1x8xi32>
    %58 = arith.addi %57, %56 : vector<1x8xi32>
    %59 = vector.broadcast %54 : vector<8x1xi32> to vector<8x8xi32>
    %60 = vector.broadcast %58 : vector<1x8xi32> to vector<8x8xi32>
    %61 = arith.cmpi eq, %59, %60 : vector<8x8xi32>
    %cst_24 = arith.constant -1.000000e+30 : f32
    %62 = vector.broadcast %cst_24 : f32 to vector<8x8xf32>
    %63 = arith.select %61, %62, %47 : vector<8x8xi1>, vector<8x8xf32>
    %cst_25 = arith.constant -1.000000e+30 : f32
    %64 = vector.broadcast %cst_25 : f32 to vector<8x8xf32>
    %65 = arith.select %61, %64, %50 : vector<8x8xi1>, vector<8x8xf32>
    %cst_26 = arith.constant dense<0xFF800000> : vector<8xf32>
    %66 = vector.multi_reduction <maximumf>, %63, %cst_26 [1] : vector<8x8xf32> to vector<8xf32>
    %67 = vector.shape_cast %66 : vector<8xf32> to vector<8x1xf32>
    %cst_27 = arith.constant dense<0xFF800000> : vector<8xf32>
    %68 = vector.multi_reduction <maximumf>, %48, %cst_27 [1] : vector<8x8xf32> to vector<8xf32>
    %69 = vector.shape_cast %68 : vector<8xf32> to vector<8x1xf32>
    %70 = arith.maximumf %67, %69 : vector<8x1xf32>
    %c0_28 = arith.constant 0 : index
    %c0_29 = arith.constant 0 : index
    %71 = vector.load %arg7[%c0_28, %c0_29] : memref<8x1xf32, #tpu.memory_space<vmem>>, vector<8x1xf32>
    %72 = arith.maximumf %71, %70 : vector<8x1xf32>
    %c0_30 = arith.constant 0 : index
    %c0_31 = arith.constant 0 : index
    %73 = vector.load %arg8[%c0_30, %c0_31] : memref<8x1xf32, #tpu.memory_space<vmem>>, vector<8x1xf32>
    %c0_32 = arith.constant 0 : index
    %c0_33 = arith.constant 0 : index
    %74 = vector.load %arg7[%c0_32, %c0_33] : memref<8x1xf32, #tpu.memory_space<vmem>>, vector<8x1xf32>
    %75 = arith.subf %74, %72 : vector<8x1xf32>
    %76 = math.exp %75 : vector<8x1xf32>
    %77 = arith.mulf %73, %76 : vector<8x1xf32>
    %78 = vector.broadcast %72 : vector<8x1xf32> to vector<8x8xf32>
    %79 = arith.subf %63, %78 : vector<8x8xf32>
    %80 = math.exp %79 : vector<8x8xf32>
    %cst_34 = arith.constant dense<0.000000e+00> : vector<8xf32>
    %81 = vector.multi_reduction <add>, %80, %cst_34 [1] : vector<8x8xf32> to vector<8xf32>
    %82 = vector.shape_cast %81 : vector<8xf32> to vector<8x1xf32>
    %83 = arith.addf %77, %82 : vector<8x1xf32>
    %84 = vector.broadcast %72 : vector<8x1xf32> to vector<8x8xf32>
    %85 = arith.subf %48, %84 : vector<8x8xf32>
    %86 = math.exp %85 : vector<8x8xf32>
    %cst_35 = arith.constant dense<0.000000e+00> : vector<8xf32>
    %87 = vector.multi_reduction <add>, %86, %cst_35 [1] : vector<8x8xf32> to vector<8xf32>
    %88 = vector.shape_cast %87 : vector<8xf32> to vector<8x1xf32>
    %89 = arith.addf %83, %88 : vector<8x1xf32>
    %c0_36 = arith.constant 0 : index
    %c0_37 = arith.constant 0 : index
    %90 = vector.load %arg8[%c0_36, %c0_37] : memref<8x1xf32, #tpu.memory_space<vmem>>, vector<8x1xf32>
    tpu.vector_store %arg8[%c0_36, %c0_37], %89 {strides = array<i32>} : memref<8x1xf32, #tpu.memory_space<vmem>>, vector<8x1xf32>,
    %c0_38 = arith.constant 0 : index
    %c0_39 = arith.constant 0 : index
    %91 = vector.load %arg7[%c0_38, %c0_39] : memref<8x1xf32, #tpu.memory_space<vmem>>, vector<8x1xf32>
    tpu.vector_store %arg7[%c0_38, %c0_39], %72 {strides = array<i32>} : memref<8x1xf32, #tpu.memory_space<vmem>>, vector<8x1xf32>,
    %cst_40 = arith.constant dense<0xFF800000> : vector<8xf32>
    %92 = vector.multi_reduction <maximumf>, %49, %cst_40 [1] : vector<8x8xf32> to vector<8xf32>
    %93 = vector.shape_cast %92 : vector<8xf32> to vector<8x1xf32>
    %cst_41 = arith.constant dense<0xFF800000> : vector<8xf32>
    %94 = vector.multi_reduction <maximumf>, %65, %cst_41 [1] : vector<8x8xf32> to vector<8xf32>
    %95 = vector.shape_cast %94 : vector<8xf32> to vector<8x1xf32>
    %96 = arith.maximumf %93, %95 : vector<8x1xf32>
    %c0_42 = arith.constant 0 : index
    %c0_43 = arith.constant 0 : index
    %97 = vector.load %arg9[%c0_42, %c0_43] : memref<8x1xf32, #tpu.memory_space<vmem>>, vector<8x1xf32>
    %98 = arith.maximumf %97, %96 : vector<8x1xf32>
    %c0_44 = arith.constant 0 : index
    %c0_45 = arith.constant 0 : index
    %99 = vector.load %arg10[%c0_44, %c0_45] : memref<8x1xf32, #tpu.memory_space<vmem>>, vector<8x1xf32>
    %c0_46 = arith.constant 0 : index
    %c0_47 = arith.constant 0 : index
    %100 = vector.load %arg9[%c0_46, %c0_47] : memref<8x1xf32, #tpu.memory_space<vmem>>, vector<8x1xf32>
    %101 = arith.subf %100, %98 : vector<8x1xf32>
    %102 = math.exp %101 : vector<8x1xf32>
    %103 = arith.mulf %99, %102 : vector<8x1xf32>
    %104 = vector.broadcast %98 : vector<8x1xf32> to vector<8x8xf32>
    %105 = arith.subf %49, %104 : vector<8x8xf32>
    %106 = math.exp %105 : vector<8x8xf32>
    %cst_48 = arith.constant dense<0.000000e+00> : vector<8xf32>
    %107 = vector.multi_reduction <add>, %106, %cst_48 [1] : vector<8x8xf32> to vector<8xf32>
    %108 = vector.shape_cast %107 : vector<8xf32> to vector<8x1xf32>
    %109 = arith.addf %103, %108 : vector<8x1xf32>
    %110 = vector.broadcast %98 : vector<8x1xf32> to vector<8x8xf32>
    %111 = arith.subf %65, %110 : vector<8x8xf32>
    %112 = math.exp %111 : vector<8x8xf32>
    %cst_49 = arith.constant dense<0.000000e+00> : vector<8xf32>
    %113 = vector.multi_reduction <add>, %112, %cst_49 [1] : vector<8x8xf32> to vector<8xf32>
    %114 = vector.shape_cast %113 : vector<8xf32> to vector<8x1xf32>
    %115 = arith.addf %109, %114 : vector<8x1xf32>
    %c0_50 = arith.constant 0 : index
    %c0_51 = arith.constant 0 : index
    %116 = vector.load %arg10[%c0_50, %c0_51] : memref<8x1xf32, #tpu.memory_space<vmem>>, vector<8x1xf32>
    tpu.vector_store %arg10[%c0_50, %c0_51], %115 {strides = array<i32>} : memref<8x1xf32, #tpu.memory_space<vmem>>, vector<8x1xf32>,
    %c0_52 = arith.constant 0 : index
    %c0_53 = arith.constant 0 : index
    %117 = vector.load %arg9[%c0_52, %c0_53] : memref<8x1xf32, #tpu.memory_space<vmem>>, vector<8x1xf32>
    tpu.vector_store %arg9[%c0_52, %c0_53], %98 {strides = array<i32>} : memref<8x1xf32, #tpu.memory_space<vmem>>, vector<8x1xf32>,
    %c0_i32_54 = arith.constant 0 : i32
    %118 = arith.cmpi eq, %arg1, %c0_i32_54 : i32
    %119 = arith.extui %118 : i1 to i32
    %c0_i32_55 = arith.constant 0 : i32
    %120 = arith.cmpi ne, %119, %c0_i32_55 : i32
    scf.if %120 {
      %121 = arith.mulf %13, %24 : vector<8x32xf32>
      %cst_56 = arith.constant dense<0.000000e+00> : vector<8xf32>
      %122 = vector.multi_reduction <add>, %121, %cst_56 [1] : vector<8x32xf32> to vector<8xf32>
      %123 = vector.shape_cast %122 : vector<8xf32> to vector<8x1xf32>
      %c0_57 = arith.constant 0 : index
      %c0_58 = arith.constant 0 : index
      %124 = vector.load %arg7[%c0_57, %c0_58] : memref<8x1xf32, #tpu.memory_space<vmem>>, vector<8x1xf32>
      %c0_59 = arith.constant 0 : index
      %c0_60 = arith.constant 0 : index
      %125 = vector.load %arg8[%c0_59, %c0_60] : memref<8x1xf32, #tpu.memory_space<vmem>>, vector<8x1xf32>
      %126 = math.log %125 : vector<8x1xf32>
      %127 = arith.addf %124, %126 : vector<8x1xf32>
      %c0_61 = arith.constant 0 : index
      %c0_62 = arith.constant 0 : index
      %128 = vector.load %arg9[%c0_61, %c0_62] : memref<8x1xf32, #tpu.memory_space<vmem>>, vector<8x1xf32>
      %c0_63 = arith.constant 0 : index
      %c0_64 = arith.constant 0 : index
      %129 = vector.load %arg10[%c0_63, %c0_64] : memref<8x1xf32, #tpu.memory_space<vmem>>, vector<8x1xf32>
      %130 = math.log %129 : vector<8x1xf32>
      %131 = arith.addf %128, %130 : vector<8x1xf32>
      %132 = arith.addf %127, %131 : vector<8x1xf32>
      %cst_65 = arith.constant 2.000000e+00 : f32
      %133 = vector.broadcast %cst_65 : f32 to vector<8x1xf32>
      %134 = arith.mulf %133, %123 : vector<8x1xf32>
      %135 = arith.subf %132, %134 : vector<8x1xf32>
      %c0_66 = arith.constant 0 : index
      %c0_67 = arith.constant 0 : index
      %136 = vector.load %arg6[%c0_66, %c0_67] : memref<8x1xf32, #tpu.memory_space<vmem>>, vector<8x1xf32>
      tpu.vector_store %arg6[%c0_66, %c0_67], %135 {strides = array<i32>} : memref<8x1xf32, #tpu.memory_space<vmem>>, vector<8x1xf32>,
    } else {
    }
    return
  }
  func.func @transform_0(%arg0: i32, %arg1: i32) -> (i32, i32) {
    %c0_i32 = arith.constant 0 : i32
    %c0_i32_0 = arith.constant 0 : i32
    return %arg0, %c0_i32 : i32, i32
  }
  func.func @transform_1(%arg0: i32, %arg1: i32) -> (i32, i32) {
    %c0_i32 = arith.constant 0 : i32
    %c0_i32_0 = arith.constant 0 : i32
    return %arg0, %c0_i32 : i32, i32
  }
  func.func @transform_2(%arg0: i32, %arg1: i32) -> (i32, i32) {
    %c0_i32 = arith.constant 0 : i32
    %c0_i32_0 = arith.constant 0 : i32
    return %arg1, %c0_i32 : i32, i32
  }
  func.func @transform_3(%arg0: i32, %arg1: i32) -> (i32, i32) {
    %c0_i32 = arith.constant 0 : i32
    %c0_i32_0 = arith.constant 0 : i32
    return %arg1, %c0_i32 : i32, i32
  }
  func.func @transform_4(%arg0: i32, %arg1: i32) -> (i32, i32) {
    %c0_i32 = arith.constant 0 : i32
    %c0_i32_0 = arith.constant 0 : i32
    return %arg0, %c0_i32 : i32, i32
  }
}

</mosaic_0001>

<bundles_post_ra>
// kernel: tpu_custom_call.1
= control target key start
LH: loop header
LB: loop body
LE: loop exit
PB: predicated region body
PF: predicated region fallthrough
CT: control target
= control target key end

     0   :  { %9 = vsyncpa [#allocation7], 0  ;;  %s762_s0 = inlined_call_operand.hbm [shape: f32[8,32], index: 0, kind: input, shape index: {}]   ;;  %s763_s1 = inlined_call_operand.hbm [shape: f32[8,32], index: 1, kind: input, shape index: {}]   ;;  %s764_s2 = inlined_call_operand.hbm [shape: f32[8,32], index: 2, kind: input, shape index: {}]   ;;  %s765_s3 = inlined_call_operand.vmem [shape: f32[8,32], index: 3, kind: input, shape index: {}]   ;;  %s766_s4 = inlined_call_operand.vmem [shape: f32[8,1], index: 4, kind: output, shape index: {}]  }
   0x1   :  { %10 = vsyncpa [#allocation9], 0  ;;  %s641_s15 = smov [#allocation8]   ;;  %s642_s17 = smov [#allocation6]  }
   0x2   :  { %s27_s16 = sshll.u32 %s641_s15, 4  ;;  %s17_s18 = sshll.u32 %s642_s17, 4  ;;  %s28_s16 = int_to_ptr.vmem [resolvable:$true] %s27_s16  ;;  %s18_s18 = int_to_ptr.vmem [resolvable:$true] %s17_s18 }
   0x3   :  { %s571_s21 = scalar_lea.hbm %s763_s1, 128 }
   0x4   :  { %p572_p0 = scmp.ne.s32.totalorder %s763_s1, %s571_s21  ;;  %p575_p1 = scmp.lt.u32.totalorder %s571_s21, %s763_s1 }
   0x6   :  { %p577_p2 = pnand %p575_p1, %p572_p0 }
   0x8   :  { %580 = shalt.err (!%p577_p2)
}
   0x9   :  { %s581_s26 = scalar_lea.vmem %s28_s16, 128  ;;  %p586_p4 = scmp.lt.s32.totalorder %s28_s16, %s28_s16 }
   0xa   :  { %p582_p3 = scmp.ne.s32.totalorder %s28_s16, %s581_s26  ;;  %p587_p5 = scmp.lt.s32.totalorder %s581_s26, %s581_s26 }
   0xc   :  { %p588_p6 = por %p587_p5, %p586_p4 }
   0xe   :  { %p589_p7 = pnand %p588_p6, %p582_p3 }
  0x10   :  { %592 = shalt.err (!%p589_p7)
}
  0x11   :  { %30 = dma.hbm_to_vmem [thread:$0]  %s763_s1, 128, %s28_s16, [#allocation9]  }
  0x12   :  { %s593_s5 = scalar_lea.hbm %s762_s0, 128 }
  0x13   :  { %p594_p8 = scmp.ne.s32.totalorder %s762_s0, %s593_s5  ;;  %p597_p9 = scmp.lt.u32.totalorder %s593_s5, %s762_s0 }
  0x15   :  { %p599_p10 = pnand %p597_p9, %p594_p8 }
  0x17   :  { %602 = shalt.err (!%p599_p10)
}
  0x18   :  { %s603_s10 = scalar_lea.vmem %s18_s18, 128  ;;  %p608_p12 = scmp.lt.s32.totalorder %s18_s18, %s18_s18 }
  0x19   :  { %p604_p11 = scmp.ne.s32.totalorder %s18_s18, %s603_s10  ;;  %p609_p13 = scmp.lt.s32.totalorder %s603_s10, %s603_s10 }
  0x1b   :  { %p610_p0 = por %p609_p13, %p608_p12 }
  0x1d   :  { %p611_p1 = pnand %p610_p0, %p604_p11 }
  0x1f   :  { %614 = shalt.err (!%p611_p1)
}
  0x20   :  { %20 = dma.hbm_to_vmem [thread:$0]  %s762_s0, 128, %s18_s18, [#allocation7]  }
  0x21   :  { %s643_s12 = smov [#allocation10]   ;;  %s615_s16 = scalar_lea.hbm %s764_s2, 128 }
  0x22   :  { %s37_s13 = sshll.u32 %s643_s12, 4  ;;  %p616_p2 = scmp.ne.s32.totalorder %s764_s2, %s615_s16  ;;  %s38_s13 = int_to_ptr.vmem [resolvable:$true] %s37_s13 }
  0x23   :  { %p619_p3 = scmp.lt.u32.totalorder %s615_s16, %s764_s2 }
  0x25   :  { %p621_p4 = pnand %p619_p3, %p616_p2 }
  0x27   :  { %624 = shalt.err (!%p621_p4)
}
  0x28   :  { %s625_s22 = scalar_lea.vmem %s38_s13, 128  ;;  %p630_p6 = scmp.lt.s32.totalorder %s38_s13, %s38_s13 }
  0x29   :  { %p626_p5 = scmp.ne.s32.totalorder %s38_s13, %s625_s22  ;;  %p631_p7 = scmp.lt.s32.totalorder %s625_s22, %s625_s22 }
  0x2b   :  { %p632_p8 = por %p631_p7, %p630_p6 }
  0x2d   :  { %p633_p9 = pnand %p632_p8, %p626_p5 }
  0x2f   :  { %636 = shalt.err (!%p633_p9)
}
  0x30   :  { %40 = dma.hbm_to_vmem [thread:$0]  %s764_s2, 128, %s38_s13, [#allocation9]  }
  0x31   :  { %637 = dma.done.wait [#allocation7], 128  }
  0x32   :  { %638 = vsyncadd [#allocation7], 4294967168 }
  0x33   :  { %639 = dma.done.wait [#allocation9], 256  }
  0x34   :  { %640 = vsyncadd [#allocation9], 4294967040  ;;  %vm63_vm0 = vcmask 261120   ;;  %v89_v0 = vld [vmem:[%s765_s3] sm:$0xff]  ;;  %v61_v1 = vld [vmem:[#allocation6] sm:$0xff]  ;;  %v644_v12 = vmov 0.0   ;;  %v391_v34 = vlaneseq }
  0x35   :  { %v80_v2 = vld [vmem:[#allocation10] sm:$0xff]  ;;  %v90_v3 = vmul.f32 %v89_v0, %v89_v0  ;;  %v62_v4 = vmul.f32 %v61_v1, %v61_v1  ;;  %v71_v6 = vld [vmem:[#allocation8] sm:$0xff]  ;;  %523 = vmatprep.subr.mxu1 %v644_v12  ;;  %518 = vmatprep.subr.mxu0 %v644_v12  ;;  %vm645_vm1 = vmmov 0   ;;  %vm403_vm2 = vcmask 64512  }
  0x36   :  { %v81_v5 = vmul.f32 %v80_v2, %v80_v2  ;;  %v72_v7 = vmul.f32 %v71_v6, %v71_v6  ;;  %525 = vmatprep.mubr.msk.f32.mxu1 %vm645_vm1, %v644_v12  ;;  %520 = vmatprep.mubr.msk.f32.mxu0 %vm645_vm1, %v644_v12  ;;  %v392_v35 = vshrl.u32 %v391_v34, 7  ;;  %v397_v36 = vand.u32 127, %v391_v34 }
  0x37   :  { %v91_v8 = vsel %vm63_vm0, %v90_v3, 0.0  ;;  %v64_v9 = vsel %vm63_vm0, %v62_v4, 0.0  ;;  %vm56_vm4 = vcmask 7168   ;;  %v646_v51 = vmov -1e+30  }
  0x38   :  { %92 = vadd.xlane.f32.xlu0 %v91_v8  ;;  %65 = vadd.xlane.f32.xlu1 %v64_v9  ;;  %v82_v10 = vsel %vm63_vm0, %v81_v5, 0.0  ;;  %v73_v11 = vsel %vm63_vm0, %v72_v7, 0.0  ;;  %vm400_vm3 = vcmp.eq.s32.totalorder %v392_v35, %v397_v36  ;;  %57 = vst.msk [vmem:[#allocation2] sm:$0xff] %vm56_vm4, %v646_v51  ;;  %58 = vst.msk [vmem:[#allocation3] sm:$0xff] %vm56_vm4, %v644_v12  ;;  %v647_v52 = vmov 0  }
  0x39   :  { %59 = vst.msk [vmem:[#allocation4] sm:$0xff] %vm56_vm4, %v646_v51  ;;  %60 = vst.msk [vmem:[#allocation5] sm:$0xff] %vm56_vm4, %v644_v12  ;;  %545 = vset.pattern.permute.xlu0 %v647_v52  ;;  %546 = vset.pattern.permute.xlu1 %v647_v52 }
  0x3c   :  { %83 = vadd.xlane.f32.xlu0 %v82_v10  ;;  %74 = vadd.xlane.f32.xlu1 %v73_v11 }
  0x3f   :  { %v411_v55 = vld [vmem:[#allocation2] sm:$0xff] }
  0x40   :  { %v447_v60 = vld [vmem:[#allocation4] sm:$0xff] }
  0xc5   :  { %v93_v13 = vpop.xlane.xlu0 %92  ;;  %v66_v14 = vpop.xlane.xlu1 %65 }
  0xc6   :  { %v94_v15 = vmax.f32 %v93_v13, 1e-24  ;;  %v67_v16 = vmax.f32 %v66_v14, 1e-24 }
  0xc8   :  { %547 = vrsqrt.f32 %v94_v15 }
  0xc9   :  { %549 = vrsqrt.f32 %v67_v16  ;;  %v84_v17 = vpop.xlane.xlu0 %83  ;;  %v75_v18 = vpop.xlane.xlu1 %74 }
  0xca   :  { %v85_v19 = vmax.f32 %v84_v17, 1e-24  ;;  %v76_v20 = vmax.f32 %v75_v18, 1e-24 }
  0xcc   :  { %551 = vrsqrt.f32 %v85_v19 }
  0xcd   :  { %553 = vrsqrt.f32 %v76_v20 }
  0xd2   :  { %v548_v21 = vpop.eup %547 }
  0xd3   :  { %v550_v22 = vpop.eup %549  ;;  %v96_v23 = vmul.f32 1.4142135, %v548_v21 }
  0xd4   :  { %v69_v24 = vmul.f32 1.4142135, %v550_v22 }
  0xd5   :  { %v97_v25 = vmul.f32 %v96_v23, %v89_v0  ;;  %v413_v23 = vld [vmem:[#allocation3] sm:$0xff] }
  0xd6   :  { %v552_v26 = vpop.eup %551  ;;  %v70_v27 = vmul.f32 %v69_v24, %v61_v1 }
  0xd7   :  { %v554_v28 = vpop.eup %553  ;;  %v87_v29 = vmul.f32 1.4142135, %v552_v26  ;;  %524 = vmatpush3.xpose.msk.msra.mxu1 %vm63_vm0, %v97_v25 }
  0xd8   :  { %v78_v30 = vmul.f32 1.4142135, %v554_v28  ;;  %533 = vmatprep.subr.mxu1 %v644_v12 }
  0xd9   :  { %v88_v31 = vmul.f32 %v87_v29, %v80_v2 }
  0xda   :  { %v79_v32 = vmul.f32 %v78_v30, %v71_v6  ;;  %526 = vmatmul.mubr.msk.f32.vlgmr.msra.gmra.mrb[0].mxu1 %vm63_vm0, %v70_v27 }
  0xdb   :  { %519 = vmatpush3.xpose.msk.msra.mxu0 %vm63_vm0, %v88_v31  ;;  %534 = vmatpush3.xpose.msk.msra.mxu1 %vm63_vm0, %v97_v25 }
  0xdc   :  { %528 = vmatprep.subr.mxu0 %v644_v12  ;;  %535 = vmatprep.mubr.msk.f32.mxu1 %vm645_vm1, %v644_v12  ;;  %v730_v33 = vmul.f32 %v79_v32, %v70_v27 }
  0xde   :  { %521 = vmatmul.mubr.msk.f32.vlgmr.msra.gmra.mrb[0].mxu0 %vm63_vm0, %v70_v27  ;;  %536 = vmatmul.mubr.msk.f32.vlgmr.msra.gmra.mrb[2].mxu1 %vm63_vm0, %v79_v32  ;;  %v479_v19 = vsel %vm63_vm0, %v730_v33, 0.0  ;;  %v449_v27 = vld [vmem:[#allocation5] sm:$0xff] }
  0xdf   :  { %529 = vmatpush3.xpose.msk.msra.mxu0 %vm63_vm0, %v88_v31  ;;  %530 = vmatprep.mubr.msk.f32.mxu0 %vm645_vm1, %v644_v12 }
  0xe2   :  { %531 = vmatmul.mubr.msk.f32.vlgmr.msra.gmra.mrb[2].mxu0 %vm63_vm0, %v79_v32 }
 0x1ad   :  { %v243_v37 = vpop.f32.mrb[0].mxu1 }
 0x1ae   :  { %v527_v38 = vpop.f32.mrb[1].mxu1  ;;  %v407_v39 = vsel %vm403_vm2, %v243_v37, -inf }
 0x1af   :  { %408 = vmax.xlane.f32.xlu1 %v407_v39 }
 0x1b1   :  { %v170_v40 = vpop.f32.mrb[0].mxu0  ;;  %v386_v41 = vpop.f32.mrb[2].mxu1 }
 0x1b2   :  { %v401_v42 = vsel %vm400_vm3, -1e+30, %v170_v40  ;;  %v522_v43 = vpop.f32.mrb[1].mxu0  ;;  %v402_v44 = vsel %vm400_vm3, -1e+30, %v386_v41  ;;  %v537_v45 = vpop.f32.mrb[3].mxu1 }
 0x1b3   :  { %v404_v46 = vsel %vm403_vm2, %v401_v42, -inf  ;;  %v443_v47 = vsel %vm403_vm2, %v402_v44, -inf }
 0x1b4   :  { %405 = vmax.xlane.f32.xlu0 %v404_v46  ;;  %444 = vmax.xlane.f32.xlu1 %v443_v47 }
 0x1b5   :  { %v316_v48 = vpop.f32.mrb[2].mxu0 }
 0x1b6   :  { %v532_v49 = vpop.f32.mrb[3].mxu0  ;;  %v440_v50 = vsel %vm403_vm2, %v316_v48, -inf }
 0x1b8   :  { %441 = vmax.xlane.f32.xlu0 %v440_v50 }
 0x23c   :  { %v409_v53 = vpop.xlane.xlu1 %408 }
 0x241   :  { %v406_v54 = vpop.xlane.xlu0 %405  ;;  %v445_v57 = vpop.xlane.xlu1 %444 }
 0x242   :  { %v410_v56 = vmax.f32 %v406_v54, %v409_v53 }
 0x244   :  { %v412_v58 = vmax.f32 %v411_v55, %v410_v56 }
 0x245   :  { %v442_v59 = vpop.xlane.xlu0 %441 }
 0x246   :  { %v414_v61 = vsub.f32 %v411_v55, %v412_v58  ;;  %439 = vst.msk [vmem:[#allocation2] sm:$0xff] %vm56_vm4, %v412_v58  ;;  %v446_v62 = vmax.f32 %v442_v59, %v445_v57  ;;  %420 = vperm.xlu0 %545, %v412_v58  }
 0x248   :  { %v448_v63 = vmax.f32 %v447_v60, %v446_v62  ;;  %v415_v20 = vmul.f32 1.442695, %v414_v61 }
 0x24a   :  { %v450_v0 = vsub.f32 %v447_v60, %v448_v63  ;;  %474 = vst.msk [vmem:[#allocation4] sm:$0xff] %vm56_vm4, %v448_v63  ;;  %456 = vperm.xlu1 %546, %v448_v63  }
 0x24c   :  { %v451_v21 = vmul.f32 1.442695, %v450_v0 }
 0x2c5   :  { %v421_v1 = vpop.permute.xlu0 %420 }
 0x2c6   :  { %v423_v2 = vsub.f32 %v401_v42, %v421_v1  ;;  %v430_v3 = vsub.f32 %v243_v37, %v421_v1  ;;  %v487_v42 = vld [vmem:[#allocation4] sm:$0xff] }
 0x2c8   :  { %v424_v4 = vmul.f32 1.442695, %v423_v2  ;;  %v431_v5 = vmul.f32 1.442695, %v430_v3 }
 0x2c9   :  { %v457_v6 = vpop.permute.xlu1 %456 }
 0x2ca   :  { %555 = vpow2.f32 %v424_v4  ;;  %v459_v7 = vsub.f32 %v316_v48, %v457_v6  ;;  %v466_v8 = vsub.f32 %v402_v44, %v457_v6  ;;  %v482_v44 = vld [vmem:[#allocation2] sm:$0xff] }
 0x2cb   :  { %557 = vpow2.f32 %v431_v5 }
 0x2cc   :  { %v460_v9 = vmul.f32 1.442695, %v459_v7  ;;  %v467_v10 = vmul.f32 1.442695, %v466_v8 }
 0x2ce   :  { %559 = vpow2.f32 %v460_v9 }
 0x2cf   :  { %561 = vpow2.f32 %v467_v10 }
 0x2d0   :  { %563 = vpow2.f32 %v415_v20 }
 0x2d1   :  { %565 = vpow2.f32 %v451_v21 }
 0x2d4   :  { %v556_v11 = vpop.eup %555 }
 0x2d5   :  { %v426_v12 = vsel %vm403_vm2, %v556_v11, 0.0  ;;  %v558_v13 = vpop.eup %557 }
 0x2d6   :  { %427 = vadd.xlane.f32.xlu1 %v426_v12  ;;  %v433_v16 = vsel %vm403_vm2, %v558_v13, 0.0 }
 0x2d8   :  { %v560_v14 = vpop.eup %559 }
 0x2d9   :  { %v462_v15 = vsel %vm403_vm2, %v560_v14, 0.0  ;;  %v562_v17 = vpop.eup %561 }
 0x2da   :  { %463 = vadd.xlane.f32.xlu0 %v462_v15  ;;  %434 = vadd.xlane.f32.xlu1 %v433_v16  ;;  %v469_v18 = vsel %vm403_vm2, %v562_v17, 0.0  ;;  %v564_v22 = vpop.eup %563 }
 0x2db   :  { %v417_v25 = vmul.f32 %v564_v22, %v413_v23  ;;  %v566_v26 = vpop.eup %565 }
 0x2dc   :  { %v453_v32 = vmul.f32 %v566_v26, %v449_v27 }
 0x2de   :  { %470 = vadd.xlane.f32.xlu1 %v469_v18 }
 0x2e2   :  { %480 = vadd.xlane.f32.xlu1 %v479_v19 }
 0x363   :  { %v428_v24 = vpop.xlane.xlu1 %427 }
 0x364   :  { %v429_v28 = vadd.f32 %v428_v24, %v417_v25 }
 0x367   :  { %v435_v29 = vpop.xlane.xlu1 %434  ;;  %v464_v30 = vpop.xlane.xlu0 %463 }
 0x368   :  { %v436_v31 = vadd.f32 %v435_v29, %v429_v28  ;;  %v465_v34 = vadd.f32 %v464_v30, %v453_v32 }
 0x36a   :  { %438 = vst.msk [vmem:[#allocation3] sm:$0xff] %vm56_vm4, %v436_v31 }
 0x36b   :  { %v471_v33 = vpop.xlane.xlu1 %470 }
 0x36c   :  { %v472_v35 = vadd.f32 %v471_v33, %v465_v34 }
 0x36e   :  { %473 = vst.msk [vmem:[#allocation5] sm:$0xff] %vm56_vm4, %v472_v35 }
 0x36f   :  { %v481_v43 = vpop.xlane.xlu1 %480 }
 0x370   :  { %v493_v48 = vmul.f32 2.0, %v481_v43 }
 0x371   :  { %v483_v36 = vld [vmem:[#allocation3] sm:$0xff] }
 0x372   :  { %567 = vlog2.f32 %v483_v36 }
 0x375   :  { %v488_v37 = vld [vmem:[#allocation5] sm:$0xff] }
 0x376   :  { %569 = vlog2.f32 %v488_v37 }
 0x37c   :  { %v568_v38 = vpop.eup %567 }
 0x37d   :  { %v485_v39 = vmul.f32 0.6931472, %v568_v38 }
 0x37f   :  { %v486_v45 = vadd.f32 %v485_v39, %v482_v44 }
 0x380   :  { %v570_v40 = vpop.eup %569 }
 0x381   :  { %v490_v41 = vmul.f32 0.6931472, %v570_v40 }
 0x383   :  { %v491_v46 = vadd.f32 %v490_v41, %v487_v42 }
 0x385   :  { %v492_v47 = vadd.f32 %v491_v46, %v486_v45 }
 0x387   :  { %v494_v49 = vsub.f32 %v492_v47, %v493_v48 }
 0x389   :  { %495 = vst.msk [vmem:[%s766_s4] sm:$0xff] %vm56_vm4, %v494_v49 }
 0x38a   :  { %500 = vsyncpa [#allocation7], 1 }
 0x38b   :  { %501 = vsyncpa [#allocation9], 1 }

</bundles_post_ra>
